<compile_context>
chip_gen: v7x
topology: tpu7x:2x2x1
jax: 0.10.0
libtpu: 0.0.40
codegen_flags: <defaults>
</compile_context>

<pallas_src>
import functools
import math

import jax
import jax.numpy as jnp
from jax.experimental import pallas as pl
from jax.experimental.pallas import tpu as pltpu

# ----------------------------- config (small) -------------------------------
VOCAB = 100
HIDDEN = 32
NUM_HEADS = 2
HEAD_DIM = HIDDEN // NUM_HEADS
INTERMEDIATE = 64
NUM_LAYERS = 2
MAX_POS = 16
TYPE_VOCAB = 2
NUM_LABELS = 3
SEQ = 8
BATCH = 2
LN_EPS = 1e-12


# ----------------------------- in-kernel helpers -----------------------------
def _layernorm(x, g, b):
    mu = jnp.mean(x, axis=-1, keepdims=True)
    var = jnp.mean((x - mu) ** 2, axis=-1, keepdims=True)
    return (x - mu) * jax.lax.rsqrt(var + LN_EPS) * g + b


def _gelu_exact(x):
    # HF BERT default: exact (erf) GELU.
    return 0.5 * x * (1.0 + jax.lax.erf(x * (1.0 / math.sqrt(2.0))))


# ------------------------------ Pallas kernels -------------------------------
def _embed_ln_kernel(we_ref, te_ref, pe_ref, g_ref, b_ref, o_ref):
    """o = LayerNorm(word_emb + type_emb + pos_emb) for one batch element."""
    x = we_ref[0] + te_ref[0] + pe_ref[...]          # [S, H]
    o_ref[0] = _layernorm(x, g_ref[...], b_ref[...])


def _encoder_layer_kernel(h_ref, wqkv_ref, bqkv_ref, wo_ref, bo_ref,
                          ln1g_ref, ln1b_ref, w1_ref, b1_ref,
                          w2_ref, b2_ref, ln2g_ref, ln2b_ref, o_ref,
                          *, num_heads, head_dim, scale):
    """One full BERT encoder layer for one batch element, fully in VMEM."""
    x = h_ref[0]                                     # [S, H]
    hidden = num_heads * head_dim

    # Fused Q/K/V projection: one [S,H] x [H,3H] matmul.
    qkv = (jnp.dot(x, wqkv_ref[...], preferred_element_type=jnp.float32)
           + bqkv_ref[...])                          # [S, 3H]
    wo = wo_ref[...]                                 # [H, H]

    # Multi-head attention; output projection folded into per-head accumulation
    # (ctx @ wo == sum_h ctx_h @ wo[h*Dh:(h+1)*Dh, :]) so no concat is needed.
    attn = jnp.zeros((x.shape[0], hidden), jnp.float32)
    for hd in range(num_heads):                      # static unroll (NUM_HEADS=2)
        lo = hd * head_dim
        q = qkv[:, lo:lo + head_dim]                             # [S, Dh]
        k = qkv[:, hidden + lo:hidden + lo + head_dim]           # [S, Dh]
        v = qkv[:, 2 * hidden + lo:2 * hidden + lo + head_dim]   # [S, Dh]
        s = jax.lax.dot_general(q, k, (((1,), (1,)), ((), ())),
                                preferred_element_type=jnp.float32) * scale
        m = jnp.max(s, axis=-1, keepdims=True)
        p = jnp.exp(s - m)
        p = p * pl.reciprocal(jnp.sum(p, axis=-1, keepdims=True), approx=True)
        ctx = jnp.dot(p, v, preferred_element_type=jnp.float32)  # [S, Dh]
        attn = attn + jnp.dot(ctx, wo[lo:lo + head_dim, :],
                              preferred_element_type=jnp.float32)
    attn = attn + bo_ref[...]

    # Residual + LayerNorm 1.
    h1 = _layernorm(attn + x, ln1g_ref[...], ln1b_ref[...])

    # Feed-forward (GELU) + residual + LayerNorm 2.
    ff = (jnp.dot(h1, w1_ref[...], preferred_element_type=jnp.float32)
          + b1_ref[...])
    ff = _gelu_exact(ff)
    ff = (jnp.dot(ff, w2_ref[...], preferred_element_type=jnp.float32)
          + b2_ref[...])
    o_ref[0] = _layernorm(ff + h1, ln2g_ref[...], ln2b_ref[...])


def _head_kernel(cls_ref, pw_ref, pb_ref, cw_ref, cb_ref, o_ref):
    """Fused pooler (tanh dense on [CLS]) + classifier linear."""
    pooled = jnp.tanh(
        jnp.dot(cls_ref[...], pw_ref[...], preferred_element_type=jnp.float32)
        + pb_ref[...])
    o_ref[...] = (jnp.dot(pooled, cw_ref[...],
                          preferred_element_type=jnp.float32) + cb_ref[...])


# ------------------------------ Pallas wrappers ------------------------------
def pallas_embed_ln(we, te, pe, gamma, beta):
    B, S, H = we.shape
    tok_spec = pl.BlockSpec((1, S, H), lambda b: (b, 0, 0))
    return pl.pallas_call(
        _embed_ln_kernel,
        out_shape=jax.ShapeDtypeStruct((B, S, H), jnp.float32),
        grid=(B,),
        in_specs=[
            tok_spec,
            tok_spec,
            pl.BlockSpec((S, H), lambda b: (0, 0)),
            pl.BlockSpec((1, H), lambda b: (0, 0)),
            pl.BlockSpec((1, H), lambda b: (0, 0)),
        ],
        out_specs=tok_spec,
        compiler_params=pltpu.CompilerParams(dimension_semantics=("parallel",)),
    )(we, te, pe, gamma.reshape(1, H), beta.reshape(1, H))


def pallas_encoder_layer(h, wqkv, bqkv, wo, bo, ln1_g, ln1_b,
                         w1, b1, w2, b2, ln2_g, ln2_b):
    B, S, H = h.shape
    I = w1.shape[1]
    tok_spec = pl.BlockSpec((1, S, H), lambda b: (b, 0, 0))

    def full(shape):
        return pl.BlockSpec(shape, lambda b: tuple(0 for _ in shape))

    kernel = functools.partial(_encoder_layer_kernel,
                               num_heads=NUM_HEADS, head_dim=HEAD_DIM,
                               scale=1.0 / math.sqrt(HEAD_DIM))
    return pl.pallas_call(
        kernel,
        out_shape=jax.ShapeDtypeStruct((B, S, H), jnp.float32),
        grid=(B,),
        in_specs=[
            tok_spec,                       # h
            full((H, 3 * H)),               # wqkv
            full((1, 3 * H)),               # bqkv
            full((H, H)),                   # wo
            full((1, H)),                   # bo
            full((1, H)), full((1, H)),     # ln1 gamma/beta
            full((H, I)), full((1, I)),     # w1 / b1
            full((I, H)), full((1, H)),     # w2 / b2
            full((1, H)), full((1, H)),     # ln2 gamma/beta
        ],
        out_specs=tok_spec,
        compiler_params=pltpu.CompilerParams(dimension_semantics=("parallel",)),
    )(h, wqkv, bqkv.reshape(1, 3 * H), wo, bo.reshape(1, H),
      ln1_g.reshape(1, H), ln1_b.reshape(1, H),
      w1, b1.reshape(1, I), w2, b2.reshape(1, H),
      ln2_g.reshape(1, H), ln2_b.reshape(1, H))


def pallas_head(cls, pool_w, pool_b, cls_w, cls_b):
    B, H = cls.shape
    L = cls_w.shape[1]
    return pl.pallas_call(
        _head_kernel,
        out_shape=jax.ShapeDtypeStruct((B, L), jnp.float32),
        grid=(1,),
        in_specs=[
            pl.BlockSpec((B, H), lambda i: (0, 0)),
            pl.BlockSpec((H, H), lambda i: (0, 0)),
            pl.BlockSpec((1, H), lambda i: (0, 0)),
            pl.BlockSpec((H, L), lambda i: (0, 0)),
            pl.BlockSpec((1, L), lambda i: (0, 0)),
        ],
        out_specs=pl.BlockSpec((B, L), lambda i: (0, 0)),
        compiler_params=pltpu.CompilerParams(dimension_semantics=("arbitrary",)),
    )(cls, pool_w, pool_b.reshape(1, H), cls_w, cls_b.reshape(1, L))


# ------------------------------ parameters ----------------------------------
def init_params(key):
    def normal(key, shape, std=0.02):
        return (std * jax.random.normal(key, shape)).astype(jnp.float32)

    keys = iter(jax.random.split(key, 256))
    p = {
        "word_emb": normal(next(keys), (VOCAB, HIDDEN)),
        "pos_emb": normal(next(keys), (MAX_POS, HIDDEN)),
        "type_emb": normal(next(keys), (TYPE_VOCAB, HIDDEN)),
        "emb_ln_g": jnp.ones((HIDDEN,), jnp.float32),
        "emb_ln_b": jnp.zeros((HIDDEN,), jnp.float32),
        "layers": [],
        "pool_w": normal(next(keys), (HIDDEN, HIDDEN)),
        "pool_b": jnp.zeros((HIDDEN,), jnp.float32),
        "cls_w": normal(next(keys), (HIDDEN, NUM_LABELS)),
        "cls_b": jnp.zeros((NUM_LABELS,), jnp.float32),
    }
    for _ in range(NUM_LAYERS):
        layer = {
            "wq": normal(next(keys), (HIDDEN, HIDDEN)),
            "bq": jnp.zeros((HIDDEN,), jnp.float32),
            "wk": normal(next(keys), (HIDDEN, HIDDEN)),
            "bk": jnp.zeros((HIDDEN,), jnp.float32),
            "wv": normal(next(keys), (HIDDEN, HIDDEN)),
            "bv": jnp.zeros((HIDDEN,), jnp.float32),
            "wo": normal(next(keys), (HIDDEN, HIDDEN)),
            "bo": jnp.zeros((HIDDEN,), jnp.float32),
            "ln1_g": jnp.ones((HIDDEN,), jnp.float32),
            "ln1_b": jnp.zeros((HIDDEN,), jnp.float32),
            "w1": normal(next(keys), (HIDDEN, INTERMEDIATE)),
            "b1": jnp.zeros((INTERMEDIATE,), jnp.float32),
            "w2": normal(next(keys), (INTERMEDIATE, HIDDEN)),
            "b2": jnp.zeros((HIDDEN,), jnp.float32),
            "ln2_g": jnp.ones((HIDDEN,), jnp.float32),
            "ln2_b": jnp.zeros((HIDDEN,), jnp.float32),
        }
        p["layers"].append(layer)
    return p


# ------------------------------ forward pass ---------------------------------
def bert_forward(params, input_ids, token_type_ids):
    B, S = input_ids.shape
    assert S <= MAX_POS, "sequence length exceeds max position embeddings"

    # Embedding gathers stay in plain JAX; sum + LayerNorm fused in Pallas.
    we = jnp.take(params["word_emb"], input_ids, axis=0)        # [B,S,H]
    te = jnp.take(params["type_emb"], token_type_ids, axis=0)   # [B,S,H]
    pe = params["pos_emb"][:S]                                  # [S,H]
    h = pallas_embed_ln(we, te, pe, params["emb_ln_g"], params["emb_ln_b"])

    # TODO(synk): attention_mask assumed all-ones (no padding); dropout is an
    # inference no-op.
    for layer in params["layers"]:
        wqkv = jnp.concatenate([layer["wq"], layer["wk"], layer["wv"]], axis=1)
        bqkv = jnp.concatenate([layer["bq"], layer["bk"], layer["bv"]], axis=0)
        h = pallas_encoder_layer(
            h, wqkv, bqkv, layer["wo"], layer["bo"],
            layer["ln1_g"], layer["ln1_b"],
            layer["w1"], layer["b1"], layer["w2"], layer["b2"],
            layer["ln2_g"], layer["ln2_b"])

    cls = h[:, 0, :]                                            # [B, H]
    logits = pallas_head(cls, params["pool_w"], params["pool_b"],
                         params["cls_w"], params["cls_b"])
    return logits                                               # [B, num_labels]


# --------------------------------- main --------------------------------------
if __name__ == "__main__":
    key = jax.random.PRNGKey(0)
    k_param, k_ids = jax.random.split(key)

    params = init_params(k_param)

    input_ids = jax.random.randint(k_ids, (BATCH, SEQ), 0, VOCAB, dtype=jnp.int32)
    token_type_ids = jnp.zeros((BATCH, SEQ), dtype=jnp.int32)
    attention_mask = jnp.ones((BATCH, SEQ), dtype=jnp.int32)  # all valid (unused)

    logits = jax.jit(bert_forward)(params, input_ids, token_type_ids)
    jax.block_until_ready(logits)
    assert logits.shape == (BATCH, NUM_LABELS)
    print("KERNEL_OK")
</pallas_src>

<mosaic_0001>
module attributes {stable_mosaic.version = 11 : i64} {
  func.func @_embed_ln_kernel(%arg0: i32, %arg1: memref<1x8x32xf32, #tpu.memory_space<vmem>>, %arg2: memref<1x8x32xf32, #tpu.memory_space<vmem>>, %arg3: memref<8x32xf32, #tpu.memory_space<vmem>>, %arg4: memref<1x32xf32, #tpu.memory_space<vmem>>, %arg5: memref<1x32xf32, #tpu.memory_space<vmem>>, %arg6: memref<1x8x32xf32, #tpu.memory_space<vmem>>) attributes {dimension_semantics = [#tpu.dimension_semantics<parallel>], iteration_bounds = array<i64: 2>, scalar_prefetch = 0 : i64, scratch_operands = 0 : i64, tpu.core_type = #tpu.core_type<tc>, window_params = [{transform_indices = @transform_0, window_bounds = array<i64: 1, 8, 32>}, {transform_indices = @transform_1, window_bounds = array<i64: 1, 8, 32>}, {pipeline_mode = #tpu.pipeline_mode<synchronous>, transform_indices = @transform_2, window_bounds = array<i64: 8, 32>}, {pipeline_mode = #tpu.pipeline_mode<synchronous>, transform_indices = @transform_3, window_bounds = array<i64: 1, 32>}, {pipeline_mode = #tpu.pipeline_mode<synchronous>, transform_indices = @transform_4, window_bounds = array<i64: 1, 32>}, {transform_indices = @transform_5, window_bounds = array<i64: 1, 8, 32>}]} {
    %c0 = arith.constant 0 : index
    %c0_0 = arith.constant 0 : index
    %c0_1 = arith.constant 0 : index
    %0 = vector.load %arg1[%c0, %c0_0, %c0_1] : memref<1x8x32xf32, #tpu.memory_space<vmem>>, vector<1x8x32xf32>
    %1 = vector.shape_cast %0 : vector<1x8x32xf32> to vector<8x32xf32>
    %c0_2 = arith.constant 0 : index
    %c0_3 = arith.constant 0 : index
    %c0_4 = arith.constant 0 : index
    %2 = vector.load %arg2[%c0_2, %c0_3, %c0_4] : memref<1x8x32xf32, #tpu.memory_space<vmem>>, vector<1x8x32xf32>
    %3 = vector.shape_cast %2 : vector<1x8x32xf32> to vector<8x32xf32>
    %4 = arith.addf %1, %3 : vector<8x32xf32>
    %c0_5 = arith.constant 0 : index
    %c0_6 = arith.constant 0 : index
    %5 = vector.load %arg3[%c0_5, %c0_6] : memref<8x32xf32, #tpu.memory_space<vmem>>, vector<8x32xf32>
    %6 = arith.addf %4, %5 : vector<8x32xf32>
    %c0_7 = arith.constant 0 : index
    %c0_8 = arith.constant 0 : index
    %7 = vector.load %arg4[%c0_7, %c0_8] : memref<1x32xf32, #tpu.memory_space<vmem>>, vector<1x32xf32>
    %c0_9 = arith.constant 0 : index
    %c0_10 = arith.constant 0 : index
    %8 = vector.load %arg5[%c0_9, %c0_10] : memref<1x32xf32, #tpu.memory_space<vmem>>, vector<1x32xf32>
    %cst = arith.constant dense<0.000000e+00> : vector<8xf32>
    %9 = vector.multi_reduction <add>, %6, %cst [1] : vector<8x32xf32> to vector<8xf32>
    %10 = vector.shape_cast %9 : vector<8xf32> to vector<8x1xf32>
    %cst_11 = arith.constant 3.200000e+01 : f32
    %11 = vector.broadcast %cst_11 : f32 to vector<8x1xf32>
    %12 = arith.divf %10, %11 : vector<8x1xf32>
    %13 = vector.broadcast %12 : vector<8x1xf32> to vector<8x32xf32>
    %14 = arith.subf %6, %13 : vector<8x32xf32>
    %15 = arith.mulf %14, %14 : vector<8x32xf32>
    %cst_12 = arith.constant dense<0.000000e+00> : vector<8xf32>
    %16 = vector.multi_reduction <add>, %15, %cst_12 [1] : vector<8x32xf32> to vector<8xf32>
    %17 = vector.shape_cast %16 : vector<8xf32> to vector<8x1xf32>
    %cst_13 = arith.constant 3.200000e+01 : f32
    %18 = vector.broadcast %cst_13 : f32 to vector<8x1xf32>
    %19 = arith.divf %17, %18 : vector<8x1xf32>
    %20 = vector.broadcast %12 : vector<8x1xf32> to vector<8x32xf32>
    %21 = arith.subf %6, %20 : vector<8x32xf32>
    %cst_14 = arith.constant 9.99999996E-13 : f32
    %22 = vector.broadcast %cst_14 : f32 to vector<8x1xf32>
    %23 = arith.addf %19, %22 : vector<8x1xf32>
    %24 = math.rsqrt %23 : vector<8x1xf32>
    %25 = vector.broadcast %24 : vector<8x1xf32> to vector<8x32xf32>
    %26 = arith.mulf %21, %25 : vector<8x32xf32>
    %27 = vector.broadcast %7 : vector<1x32xf32> to vector<8x32xf32>
    %28 = arith.mulf %26, %27 : vector<8x32xf32>
    %29 = vector.broadcast %8 : vector<1x32xf32> to vector<8x32xf32>
    %30 = arith.addf %28, %29 : vector<8x32xf32>
    %c0_15 = arith.constant 0 : index
    %c0_16 = arith.constant 0 : index
    %c0_17 = arith.constant 0 : index
    %31 = vector.load %arg6[%c0_15, %c0_16, %c0_17] : memref<1x8x32xf32, #tpu.memory_space<vmem>>, vector<1x8x32xf32>
    %32 = vector.shape_cast %31 : vector<1x8x32xf32> to vector<8x32xf32>
    %33 = vector.shape_cast %30 : vector<8x32xf32> to vector<1x8x32xf32>
    tpu.vector_store %arg6[%c0_15, %c0_16, %c0_17], %33 {strides = array<i32>} : memref<1x8x32xf32, #tpu.memory_space<vmem>>, vector<1x8x32xf32>,
    return
  }
  func.func @transform_0(%arg0: i32) -> (i32, i32, i32) {
    %c0_i32 = arith.constant 0 : i32
    %c0_i32_0 = arith.constant 0 : i32
    %c0_i32_1 = arith.constant 0 : i32
    return %arg0, %c0_i32, %c0_i32_0 : i32, i32, i32
  }
  func.func @transform_1(%arg0: i32) -> (i32, i32, i32) {
    %c0_i32 = arith.constant 0 : i32
    %c0_i32_0 = arith.constant 0 : i32
    %c0_i32_1 = arith.constant 0 : i32
    return %arg0, %c0_i32, %c0_i32_0 : i32, i32, i32
  }
  func.func @transform_2(%arg0: i32) -> (i32, i32) {
    %c0_i32 = arith.constant 0 : i32
    %c0_i32_0 = arith.constant 0 : i32
    %c0_i32_1 = arith.constant 0 : i32
    return %c0_i32, %c0_i32_0 : i32, i32
  }
  func.func @transform_3(%arg0: i32) -> (i32, i32) {
    %c0_i32 = arith.constant 0 : i32
    %c0_i32_0 = arith.constant 0 : i32
    %c0_i32_1 = arith.constant 0 : i32
    return %c0_i32, %c0_i32_0 : i32, i32
  }
  func.func @transform_4(%arg0: i32) -> (i32, i32) {
    %c0_i32 = arith.constant 0 : i32
    %c0_i32_0 = arith.constant 0 : i32
    %c0_i32_1 = arith.constant 0 : i32
    return %c0_i32, %c0_i32_0 : i32, i32
  }
  func.func @transform_5(%arg0: i32) -> (i32, i32, i32) {
    %c0_i32 = arith.constant 0 : i32
    %c0_i32_0 = arith.constant 0 : i32
    %c0_i32_1 = arith.constant 0 : i32
    return %arg0, %c0_i32, %c0_i32_0 : i32, i32, i32
  }
}

module attributes {stable_mosaic.version = 11 : i64} {
  func.func @_encoder_layer_kernel(%arg0: i32, %arg1: memref<1x8x32xf32, #tpu.memory_space<vmem>>, %arg2: memref<32x96xf32, #tpu.memory_space<vmem>>, %arg3: memref<1x96xf32, #tpu.memory_space<vmem>>, %arg4: memref<32x32xf32, #tpu.memory_space<vmem>>, %arg5: memref<1x32xf32, #tpu.memory_space<vmem>>, %arg6: memref<1x32xf32, #tpu.memory_space<vmem>>, %arg7: memref<1x32xf32, #tpu.memory_space<vmem>>, %arg8: memref<32x64xf32, #tpu.memory_space<vmem>>, %arg9: memref<1x64xf32, #tpu.memory_space<vmem>>, %arg10: memref<64x32xf32, #tpu.memory_space<vmem>>, %arg11: memref<1x32xf32, #tpu.memory_space<vmem>>, %arg12: memref<1x32xf32, #tpu.memory_space<vmem>>, %arg13: memref<1x32xf32, #tpu.memory_space<vmem>>, %arg14: memref<1x8x32xf32, #tpu.memory_space<vmem>>) attributes {dimension_semantics = [#tpu.dimension_semantics<parallel>], iteration_bounds = array<i64: 2>, scalar_prefetch = 0 : i64, scratch_operands = 0 : i64, tpu.core_type = #tpu.core_type<tc>, window_params = [{transform_indices = @transform_0, window_bounds = array<i64: 1, 8, 32>}, {pipeline_mode = #tpu.pipeline_mode<synchronous>, transform_indices = @transform_1, window_bounds = array<i64: 32, 96>}, {pipeline_mode = #tpu.pipeline_mode<synchronous>, transform_indices = @transform_2, window_bounds = array<i64: 1, 96>}, {pipeline_mode = #tpu.pipeline_mode<synchronous>, transform_indices = @transform_3, window_bounds = array<i64: 32, 32>}, {pipeline_mode = #tpu.pipeline_mode<synchronous>, transform_indices = @transform_4, window_bounds = array<i64: 1, 32>}, {pipeline_mode = #tpu.pipeline_mode<synchronous>, transform_indices = @transform_5, window_bounds = array<i64: 1, 32>}, {pipeline_mode = #tpu.pipeline_mode<synchronous>, transform_indices = @transform_6, window_bounds = array<i64: 1, 32>}, {pipeline_mode = #tpu.pipeline_mode<synchronous>, transform_indices = @transform_7, window_bounds = array<i64: 32, 64>}, {pipeline_mode = #tpu.pipeline_mode<synchronous>, transform_indices = @transform_8, window_bounds = array<i64: 1, 64>}, {pipeline_mode = #tpu.pipeline_mode<synchronous>, transform_indices = @transform_9, window_bounds = array<i64: 64, 32>}, {pipeline_mode = #tpu.pipeline_mode<synchronous>, transform_indices = @transform_10, window_bounds = array<i64: 1, 32>}, {pipeline_mode = #tpu.pipeline_mode<synchronous>, transform_indices = @transform_11, window_bounds = array<i64: 1, 32>}, {pipeline_mode = #tpu.pipeline_mode<synchronous>, transform_indices = @transform_12, window_bounds = array<i64: 1, 32>}, {transform_indices = @transform_13, window_bounds = array<i64: 1, 8, 32>}]} {
    %c0 = arith.constant 0 : index
    %c0_0 = arith.constant 0 : index
    %c0_1 = arith.constant 0 : index
    %0 = vector.load %arg1[%c0, %c0_0, %c0_1] : memref<1x8x32xf32, #tpu.memory_space<vmem>>, vector<1x8x32xf32>
    %1 = vector.shape_cast %0 : vector<1x8x32xf32> to vector<8x32xf32>
    %c0_2 = arith.constant 0 : index
    %c0_3 = arith.constant 0 : index
    %2 = vector.load %arg2[%c0_2, %c0_3] : memref<32x96xf32, #tpu.memory_space<vmem>>, vector<32x96xf32>
    %cst = arith.constant dense<0.000000e+00> : vector<8x96xf32>
    %3 = tpu.matmul %1, %2, %cst {dimension_numbers = #tpu.dot_dimension_numbers<[1], [0], [0], [1], [0, 0, 1, 1], [], []>} : vector<8x32xf32>, vector<32x96xf32>, vector<8x96xf32> -> vector<8x96xf32>
    %c0_4 = arith.constant 0 : index
    %c0_5 = arith.constant 0 : index
    %4 = vector.load %arg3[%c0_4, %c0_5] : memref<1x96xf32, #tpu.memory_space<vmem>>, vector<1x96xf32>
    %5 = vector.broadcast %4 : vector<1x96xf32> to vector<8x96xf32>
    %6 = arith.addf %3, %5 : vector<8x96xf32>
    %c0_6 = arith.constant 0 : index
    %c0_7 = arith.constant 0 : index
    %7 = vector.load %arg4[%c0_6, %c0_7] : memref<32x32xf32, #tpu.memory_space<vmem>>, vector<32x32xf32>
    %cst_8 = arith.constant 0.000000e+00 : f32
    %8 = vector.broadcast %cst_8 : f32 to vector<8x32xf32>
    %9 = vector.extract_strided_slice %6 {offsets = [0, 0], sizes = [8, 16], strides = [1, 1]} : vector<8x96xf32> to vector<8x16xf32>
    %10 = vector.extract_strided_slice %6 {offsets = [0, 32], sizes = [8, 16], strides = [1, 1]} : vector<8x96xf32> to vector<8x16xf32>
    %11 = vector.extract_strided_slice %6 {offsets = [0, 64], sizes = [8, 16], strides = [1, 1]} : vector<8x96xf32> to vector<8x16xf32>
    %cst_9 = arith.constant dense<0.000000e+00> : vector<8x8xf32>
    %12 = tpu.matmul %9, %10, %cst_9 {dimension_numbers = #tpu.dot_dimension_numbers<[1], [1], [0], [0], [0, 0, 1, 0], [], []>} : vector<8x16xf32>, vector<8x16xf32>, vector<8x8xf32> -> vector<8x8xf32>
    %cst_10 = arith.constant 2.500000e-01 : f32
    %13 = vector.broadcast %cst_10 : f32 to vector<8x8xf32>
    %14 = arith.mulf %12, %13 : vector<8x8xf32>
    %cst_11 = arith.constant dense<0xFF800000> : vector<8xf32>
    %15 = vector.multi_reduction <maximumf>, %14, %cst_11 [1] : vector<8x8xf32> to vector<8xf32>
    %16 = vector.shape_cast %15 : vector<8xf32> to vector<8x1xf32>
    %17 = vector.broadcast %16 : vector<8x1xf32> to vector<8x8xf32>
    %18 = arith.subf %14, %17 : vector<8x8xf32>
    %19 = math.exp %18 : vector<8x8xf32>
    %cst_12 = arith.constant dense<0.000000e+00> : vector<8xf32>
    %20 = vector.multi_reduction <add>, %19, %cst_12 [1] : vector<8x8xf32> to vector<8xf32>
    %21 = vector.shape_cast %20 : vector<8xf32> to vector<8x1xf32>
    %22 = tpu.reciprocal %21 {approx = true} : vector<8x1xf32> -> vector<8x1xf32>
    %23 = vector.broadcast %22 : vector<8x1xf32> to vector<8x8xf32>
    %24 = arith.mulf %19, %23 : vector<8x8xf32>
    %cst_13 = arith.constant dense<0.000000e+00> : vector<8x16xf32>
    %25 = tpu.matmul %24, %11, %cst_13 {dimension_numbers = #tpu.dot_dimension_numbers<[1], [0], [0], [1], [0, 0, 1, 1], [], []>} : vector<8x8xf32>, vector<8x16xf32>, vector<8x16xf32> -> vector<8x16xf32>
    %26 = vector.extract_strided_slice %7 {offsets = [0, 0], sizes = [16, 32], strides = [1, 1]} : vector<32x32xf32> to vector<16x32xf32>
    %cst_14 = arith.constant dense<0.000000e+00> : vector<8x32xf32>
    %27 = tpu.matmul %25, %26, %cst_14 {dimension_numbers = #tpu.dot_dimension_numbers<[1], [0], [0], [1], [0, 0, 1, 1], [], []>} : vector<8x16xf32>, vector<16x32xf32>, vector<8x32xf32> -> vector<8x32xf32>
    %28 = arith.addf %8, %27 : vector<8x32xf32>
    %29 = vector.extract_strided_slice %6 {offsets = [0, 16], sizes = [8, 16], strides = [1, 1]} : vector<8x96xf32> to vector<8x16xf32>
    %30 = vector.extract_strided_slice %6 {offsets = [0, 48], sizes = [8, 16], strides = [1, 1]} : vector<8x96xf32> to vector<8x16xf32>
    %31 = vector.extract_strided_slice %6 {offsets = [0, 80], sizes = [8, 16], strides = [1, 1]} : vector<8x96xf32> to vector<8x16xf32>
    %cst_15 = arith.constant dense<0.000000e+00> : vector<8x8xf32>
    %32 = tpu.matmul %29, %30, %cst_15 {dimension_numbers = #tpu.dot_dimension_numbers<[1], [1], [0], [0], [0, 0, 1, 0], [], []>} : vector<8x16xf32>, vector<8x16xf32>, vector<8x8xf32> -> vector<8x8xf32>
    %cst_16 = arith.constant 2.500000e-01 : f32
    %33 = vector.broadcast %cst_16 : f32 to vector<8x8xf32>
    %34 = arith.mulf %32, %33 : vector<8x8xf32>
    %cst_17 = arith.constant dense<0xFF800000> : vector<8xf32>
    %35 = vector.multi_reduction <maximumf>, %34, %cst_17 [1] : vector<8x8xf32> to vector<8xf32>
    %36 = vector.shape_cast %35 : vector<8xf32> to vector<8x1xf32>
    %37 = vector.broadcast %36 : vector<8x1xf32> to vector<8x8xf32>
    %38 = arith.subf %34, %37 : vector<8x8xf32>
    %39 = math.exp %38 : vector<8x8xf32>
    %cst_18 = arith.constant dense<0.000000e+00> : vector<8xf32>
    %40 = vector.multi_reduction <add>, %39, %cst_18 [1] : vector<8x8xf32> to vector<8xf32>
    %41 = vector.shape_cast %40 : vector<8xf32> to vector<8x1xf32>
    %42 = tpu.reciprocal %41 {approx = true} : vector<8x1xf32> -> vector<8x1xf32>
    %43 = vector.broadcast %42 : vector<8x1xf32> to vector<8x8xf32>
    %44 = arith.mulf %39, %43 : vector<8x8xf32>
    %cst_19 = arith.constant dense<0.000000e+00> : vector<8x16xf32>
    %45 = tpu.matmul %44, %31, %cst_19 {dimension_numbers = #tpu.dot_dimension_numbers<[1], [0], [0], [1], [0, 0, 1, 1], [], []>} : vector<8x8xf32>, vector<8x16xf32>, vector<8x16xf32> -> vector<8x16xf32>
    %46 = vector.extract_strided_slice %7 {offsets = [16, 0], sizes = [16, 32], strides = [1, 1]} : vector<32x32xf32> to vector<16x32xf32>
    %cst_20 = arith.constant dense<0.000000e+00> : vector<8x32xf32>
    %47 = tpu.matmul %45, %46, %cst_20 {dimension_numbers = #tpu.dot_dimension_numbers<[1], [0], [0], [1], [0, 0, 1, 1], [], []>} : vector<8x16xf32>, vector<16x32xf32>, vector<8x32xf32> -> vector<8x32xf32>
    %48 = arith.addf %28, %47 : vector<8x32xf32>
    %c0_21 = arith.constant 0 : index
    %c0_22 = arith.constant 0 : index
    %49 = vector.load %arg5[%c0_21, %c0_22] : memref<1x32xf32, #tpu.memory_space<vmem>>, vector<1x32xf32>
    %50 = vector.broadcast %49 : vector<1x32xf32> to vector<8x32xf32>
    %51 = arith.addf %48, %50 : vector<8x32xf32>
    %52 = arith.addf %51, %1 : vector<8x32xf32>
    %c0_23 = arith.constant 0 : index
    %c0_24 = arith.constant 0 : index
    %53 = vector.load %arg6[%c0_23, %c0_24] : memref<1x32xf32, #tpu.memory_space<vmem>>, vector<1x32xf32>
    %c0_25 = arith.constant 0 : index
    %c0_26 = arith.constant 0 : index
    %54 = vector.load %arg7[%c0_25, %c0_26] : memref<1x32xf32, #tpu.memory_space<vmem>>, vector<1x32xf32>
    %cst_27 = arith.constant dense<0.000000e+00> : vector<8xf32>
    %55 = vector.multi_reduction <add>, %52, %cst_27 [1] : vector<8x32xf32> to vector<8xf32>
    %56 = vector.shape_cast %55 : vector<8xf32> to vector<8x1xf32>
    %cst_28 = arith.constant 3.200000e+01 : f32
    %57 = vector.broadcast %cst_28 : f32 to vector<8x1xf32>
    %58 = arith.divf %56, %57 : vector<8x1xf32>
    %59 = vector.broadcast %58 : vector<8x1xf32> to vector<8x32xf32>
    %60 = arith.subf %52, %59 : vector<8x32xf32>
    %61 = arith.mulf %60, %60 : vector<8x32xf32>
    %cst_29 = arith.constant dense<0.000000e+00> : vector<8xf32>
    %62 = vector.multi_reduction <add>, %61, %cst_29 [1] : vector<8x32xf32> to vector<8xf32>
    %63 = vector.shape_cast %62 : vector<8xf32> to vector<8x1xf32>
    %cst_30 = arith.constant 3.200000e+01 : f32
    %64 = vector.broadcast %cst_30 : f32 to vector<8x1xf32>
    %65 = arith.divf %63, %64 : vector<8x1xf32>
    %66 = vector.broadcast %58 : vector<8x1xf32> to vector<8x32xf32>
    %67 = arith.subf %52, %66 : vector<8x32xf32>
    %cst_31 = arith.constant 9.99999996E-13 : f32
    %68 = vector.broadcast %cst_31 : f32 to vector<8x1xf32>
    %69 = arith.addf %65, %68 : vector<8x1xf32>
    %70 = math.rsqrt %69 : vector<8x1xf32>
    %71 = vector.broadcast %70 : vector<8x1xf32> to vector<8x32xf32>
    %72 = arith.mulf %67, %71 : vector<8x32xf32>
    %73 = vector.broadcast %53 : vector<1x32xf32> to vector<8x32xf32>
    %74 = arith.mulf %72, %73 : vector<8x32xf32>
    %75 = vector.broadcast %54 : vector<1x32xf32> to vector<8x32xf32>
    %76 = arith.addf %74, %75 : vector<8x32xf32>
    %c0_32 = arith.constant 0 : index
    %c0_33 = arith.constant 0 : index
    %77 = vector.load %arg8[%c0_32, %c0_33] : memref<32x64xf32, #tpu.memory_space<vmem>>, vector<32x64xf32>
    %cst_34 = arith.constant dense<0.000000e+00> : vector<8x64xf32>
    %78 = tpu.matmul %76, %77, %cst_34 {dimension_numbers = #tpu.dot_dimension_numbers<[1], [0], [0], [1], [0, 0, 1, 1], [], []>} : vector<8x32xf32>, vector<32x64xf32>, vector<8x64xf32> -> vector<8x64xf32>
    %c0_35 = arith.constant 0 : index
    %c0_36 = arith.constant 0 : index
    %79 = vector.load %arg9[%c0_35, %c0_36] : memref<1x64xf32, #tpu.memory_space<vmem>>, vector<1x64xf32>
    %80 = vector.broadcast %79 : vector<1x64xf32> to vector<8x64xf32>
    %81 = arith.addf %78, %80 : vector<8x64xf32>
    %cst_37 = arith.constant 5.000000e-01 : f32
    %82 = vector.broadcast %cst_37 : f32 to vector<8x64xf32>
    %83 = arith.mulf %82, %81 : vector<8x64xf32>
    %cst_38 = arith.constant 0.707106769 : f32
    %84 = vector.broadcast %cst_38 : f32 to vector<8x64xf32>
    %85 = arith.mulf %81, %84 : vector<8x64xf32>
    %86 = math.erf %85 : vector<8x64xf32>
    %cst_39 = arith.constant 1.000000e+00 : f32
    %87 = vector.broadcast %cst_39 : f32 to vector<8x64xf32>
    %88 = arith.addf %87, %86 : vector<8x64xf32>
    %89 = arith.mulf %83, %88 : vector<8x64xf32>
    %c0_40 = arith.constant 0 : index
    %c0_41 = arith.constant 0 : index
    %90 = vector.load %arg10[%c0_40, %c0_41] : memref<64x32xf32, #tpu.memory_space<vmem>>, vector<64x32xf32>
    %cst_42 = arith.constant dense<0.000000e+00> : vector<8x32xf32>
    %91 = tpu.matmul %89, %90, %cst_42 {dimension_numbers = #tpu.dot_dimension_numbers<[1], [0], [0], [1], [0, 0, 1, 1], [], []>} : vector<8x64xf32>, vector<64x32xf32>, vector<8x32xf32> -> vector<8x32xf32>
    %c0_43 = arith.constant 0 : index
    %c0_44 = arith.constant 0 : index
    %92 = vector.load %arg11[%c0_43, %c0_44] : memref<1x32xf32, #tpu.memory_space<vmem>>, vector<1x32xf32>
    %93 = vector.broadcast %92 : vector<1x32xf32> to vector<8x32xf32>
    %94 = arith.addf %91, %93 : vector<8x32xf32>
    %95 = arith.addf %94, %76 : vector<8x32xf32>
    %c0_45 = arith.constant 0 : index
    %c0_46 = arith.constant 0 : index
    %96 = vector.load %arg12[%c0_45, %c0_46] : memref<1x32xf32, #tpu.memory_space<vmem>>, vector<1x32xf32>
    %c0_47 = arith.constant 0 : index
    %c0_48 = arith.constant 0 : index
    %97 = vector.load %arg13[%c0_47, %c0_48] : memref<1x32xf32, #tpu.memory_space<vmem>>, vector<1x32xf32>
    %cst_49 = arith.constant dense<0.000000e+00> : vector<8xf32>
    %98 = vector.multi_reduction <add>, %95, %cst_49 [1] : vector<8x32xf32> to vector<8xf32>
    %99 = vector.shape_cast %98 : vector<8xf32> to vector<8x1xf32>
    %cst_50 = arith.constant 3.200000e+01 : f32
    %100 = vector.broadcast %cst_50 : f32 to vector<8x1xf32>
    %101 = arith.divf %99, %100 : vector<8x1xf32>
    %102 = vector.broadcast %101 : vector<8x1xf32> to vector<8x32xf32>
    %103 = arith.subf %95, %102 : vector<8x32xf32>
    %104 = arith.mulf %103, %103 : vector<8x32xf32>
    %cst_51 = arith.constant dense<0.000000e+00> : vector<8xf32>
    %105 = vector.multi_reduction <add>, %104, %cst_51 [1] : vector<8x32xf32> to vector<8xf32>
    %106 = vector.shape_cast %105 : vector<8xf32> to vector<8x1xf32>
    %cst_52 = arith.constant 3.200000e+01 : f32
    %107 = vector.broadcast %cst_52 : f32 to vector<8x1xf32>
    %108 = arith.divf %106, %107 : vector<8x1xf32>
    %109 = vector.broadcast %101 : vector<8x1xf32> to vector<8x32xf32>
    %110 = arith.subf %95, %109 : vector<8x32xf32>
    %cst_53 = arith.constant 9.99999996E-13 : f32
    %111 = vector.broadcast %cst_53 : f32 to vector<8x1xf32>
    %112 = arith.addf %108, %111 : vector<8x1xf32>
    %113 = math.rsqrt %112 : vector<8x1xf32>
    %114 = vector.broadcast %113 : vector<8x1xf32> to vector<8x32xf32>
    %115 = arith.mulf %110, %114 : vector<8x32xf32>
    %116 = vector.broadcast %96 : vector<1x32xf32> to vector<8x32xf32>
    %117 = arith.mulf %115, %116 : vector<8x32xf32>
    %118 = vector.broadcast %97 : vector<1x32xf32> to vector<8x32xf32>
    %119 = arith.addf %117, %118 : vector<8x32xf32>
    %c0_54 = arith.constant 0 : index
    %c0_55 = arith.constant 0 : index
    %c0_56 = arith.constant 0 : index
    %120 = vector.load %arg14[%c0_54, %c0_55, %c0_56] : memref<1x8x32xf32, #tpu.memory_space<vmem>>, vector<1x8x32xf32>
    %121 = vector.shape_cast %120 : vector<1x8x32xf32> to vector<8x32xf32>
    %122 = vector.shape_cast %119 : vector<8x32xf32> to vector<1x8x32xf32>
    tpu.vector_store %arg14[%c0_54, %c0_55, %c0_56], %122 {strides = array<i32>} : memref<1x8x32xf32, #tpu.memory_space<vmem>>, vector<1x8x32xf32>,
    return
  }
  func.func @transform_0(%arg0: i32) -> (i32, i32, i32) {
    %c0_i32 = arith.constant 0 : i32
    %c0_i32_0 = arith.constant 0 : i32
    %c0_i32_1 = arith.constant 0 : i32
    return %arg0, %c0_i32, %c0_i32_0 : i32, i32, i32
  }
  func.func @transform_1(%arg0: i32) -> (i32, i32) {
    %c0_i32 = arith.constant 0 : i32
    %c0_i32_0 = arith.constant 0 : i32
    %c0_i32_1 = arith.constant 0 : i32
    return %c0_i32, %c0_i32_0 : i32, i32
  }
  func.func @transform_2(%arg0: i32) -> (i32, i32) {
    %c0_i32 = arith.constant 0 : i32
    %c0_i32_0 = arith.constant 0 : i32
    %c0_i32_1 = arith.constant 0 : i32
    return %c0_i32, %c0_i32_0 : i32, i32
  }
  func.func @transform_3(%arg0: i32) -> (i32, i32) {
    %c0_i32 = arith.constant 0 : i32
    %c0_i32_0 = arith.constant 0 : i32
    %c0_i32_1 = arith.constant 0 : i32
    return %c0_i32, %c0_i32_0 : i32, i32
  }
  func.func @transform_4(%arg0: i32) -> (i32, i32) {
    %c0_i32 = arith.constant 0 : i32
    %c0_i32_0 = arith.constant 0 : i32
    %c0_i32_1 = arith.constant 0 : i32
    return %c0_i32, %c0_i32_0 : i32, i32
  }
  func.func @transform_5(%arg0: i32) -> (i32, i32) {
    %c0_i32 = arith.constant 0 : i32
    %c0_i32_0 = arith.constant 0 : i32
    %c0_i32_1 = arith.constant 0 : i32
    return %c0_i32, %c0_i32_0 : i32, i32
  }
  func.func @transform_6(%arg0: i32) -> (i32, i32) {
    %c0_i32 = arith.constant 0 : i32
    %c0_i32_0 = arith.constant 0 : i32
    %c0_i32_1 = arith.constant 0 : i32
    return %c0_i32, %c0_i32_0 : i32, i32
  }
  func.func @transform_7(%arg0: i32) -> (i32, i32) {
    %c0_i32 = arith.constant 0 : i32
    %c0_i32_0 = arith.constant 0 : i32
    %c0_i32_1 = arith.constant 0 : i32
    return %c0_i32, %c0_i32_0 : i32, i32
  }
  func.func @transform_8(%arg0: i32) -> (i32, i32) {
    %c0_i32 = arith.constant 0 : i32
    %c0_i32_0 = arith.constant 0 : i32
    %c0_i32_1 = arith.constant 0 : i32
    return %c0_i32, %c0_i32_0 : i32, i32
  }
  func.func @transform_9(%arg0: i32) -> (i32, i32) {
    %c0_i32 = arith.constant 0 : i32
    %c0_i32_0 = arith.constant 0 : i32
    %c0_i32_1 = arith.constant 0 : i32
    return %c0_i32, %c0_i32_0 : i32, i32
  }
  func.func @transform_10(%arg0: i32) -> (i32, i32) {
    %c0_i32 = arith.constant 0 : i32
    %c0_i32_0 = arith.constant 0 : i32
    %c0_i32_1 = arith.constant 0 : i32
    return %c0_i32, %c0_i32_0 : i32, i32
  }
  func.func @transform_11(%arg0: i32) -> (i32, i32) {
    %c0_i32 = arith.constant 0 : i32
    %c0_i32_0 = arith.constant 0 : i32
    %c0_i32_1 = arith.constant 0 : i32
    return %c0_i32, %c0_i32_0 : i32, i32
  }
  func.func @transform_12(%arg0: i32) -> (i32, i32) {
    %c0_i32 = arith.constant 0 : i32
    %c0_i32_0 = arith.constant 0 : i32
    %c0_i32_1 = arith.constant 0 : i32
    return %c0_i32, %c0_i32_0 : i32, i32
  }
  func.func @transform_13(%arg0: i32) -> (i32, i32, i32) {
    %c0_i32 = arith.constant 0 : i32
    %c0_i32_0 = arith.constant 0 : i32
    %c0_i32_1 = arith.constant 0 : i32
    return %arg0, %c0_i32, %c0_i32_0 : i32, i32, i32
  }
}

module attributes {stable_mosaic.version = 11 : i64} {
  func.func @_head_kernel(%arg0: i32, %arg1: memref<2x32xf32, #tpu.memory_space<vmem>>, %arg2: memref<32x32xf32, #tpu.memory_space<vmem>>, %arg3: memref<1x32xf32, #tpu.memory_space<vmem>>, %arg4: memref<32x3xf32, #tpu.memory_space<vmem>>, %arg5: memref<1x3xf32, #tpu.memory_space<vmem>>, %arg6: memref<2x3xf32, #tpu.memory_space<vmem>>) attributes {dimension_semantics = [#tpu.dimension_semantics<arbitrary>], iteration_bounds = array<i64: 1>, scalar_prefetch = 0 : i64, scratch_operands = 0 : i64, tpu.core_type = #tpu.core_type<tc>, window_params = [{pipeline_mode = #tpu.pipeline_mode<synchronous>, transform_indices = @transform_0, window_bounds = array<i64: 2, 32>}, {pipeline_mode = #tpu.pipeline_mode<synchronous>, transform_indices = @transform_1, window_bounds = array<i64: 32, 32>}, {pipeline_mode = #tpu.pipeline_mode<synchronous>, transform_indices = @transform_2, window_bounds = array<i64: 1, 32>}, {pipeline_mode = #tpu.pipeline_mode<synchronous>, transform_indices = @transform_3, window_bounds = array<i64: 32, 3>}, {pipeline_mode = #tpu.pipeline_mode<synchronous>, transform_indices = @transform_4, window_bounds = array<i64: 1, 3>}, {pipeline_mode = #tpu.pipeline_mode<synchronous>, transform_indices = @transform_5, window_bounds = array<i64: 2, 3>}]} {
    %c0 = arith.constant 0 : index
    %c0_0 = arith.constant 0 : index
    %0 = vector.load %arg1[%c0, %c0_0] : memref<2x32xf32, #tpu.memory_space<vmem>>, vector<2x32xf32>
    %c0_1 = arith.constant 0 : index
    %c0_2 = arith.constant 0 : index
    %1 = vector.load %arg2[%c0_1, %c0_2] : memref<32x32xf32, #tpu.memory_space<vmem>>, vector<32x32xf32>
    %cst = arith.constant dense<0.000000e+00> : vector<2x32xf32>
    %2 = tpu.matmul %0, %1, %cst {dimension_numbers = #tpu.dot_dimension_numbers<[1], [0], [0], [1], [0, 0, 1, 1], [], []>} : vector<2x32xf32>, vector<32x32xf32>, vector<2x32xf32> -> vector<2x32xf32>
    %c0_3 = arith.constant 0 : index
    %c0_4 = arith.constant 0 : index
    %3 = vector.load %arg3[%c0_3, %c0_4] : memref<1x32xf32, #tpu.memory_space<vmem>>, vector<1x32xf32>
    %4 = vector.broadcast %3 : vector<1x32xf32> to vector<2x32xf32>
    %5 = arith.addf %2, %4 : vector<2x32xf32>
    %6 = math.tanh %5 : vector<2x32xf32>
    %c0_5 = arith.constant 0 : index
    %c0_6 = arith.constant 0 : index
    %7 = vector.load %arg4[%c0_5, %c0_6] : memref<32x3xf32, #tpu.memory_space<vmem>>, vector<32x3xf32>
    %cst_7 = arith.constant dense<0.000000e+00> : vector<2x3xf32>
    %8 = tpu.matmul %6, %7, %cst_7 {dimension_numbers = #tpu.dot_dimension_numbers<[1], [0], [0], [1], [0, 0, 1, 1], [], []>} : vector<2x32xf32>, vector<32x3xf32>, vector<2x3xf32> -> vector<2x3xf32>
    %c0_8 = arith.constant 0 : index
    %c0_9 = arith.constant 0 : index
    %9 = vector.load %arg5[%c0_8, %c0_9] : memref<1x3xf32, #tpu.memory_space<vmem>>, vector<1x3xf32>
    %10 = vector.broadcast %9 : vector<1x3xf32> to vector<2x3xf32>
    %11 = arith.addf %8, %10 : vector<2x3xf32>
    %c0_10 = arith.constant 0 : index
    %c0_11 = arith.constant 0 : index
    %12 = vector.load %arg6[%c0_10, %c0_11] : memref<2x3xf32, #tpu.memory_space<vmem>>, vector<2x3xf32>
    tpu.vector_store %arg6[%c0_10, %c0_11], %11 {strides = array<i32>} : memref<2x3xf32, #tpu.memory_space<vmem>>, vector<2x3xf32>,
    return
  }
  func.func @transform_0(%arg0: i32) -> (i32, i32) {
    %c0_i32 = arith.constant 0 : i32
    %c0_i32_0 = arith.constant 0 : i32
    %c0_i32_1 = arith.constant 0 : i32
    return %c0_i32, %c0_i32_0 : i32, i32
  }
  func.func @transform_1(%arg0: i32) -> (i32, i32) {
    %c0_i32 = arith.constant 0 : i32
    %c0_i32_0 = arith.constant 0 : i32
    %c0_i32_1 = arith.constant 0 : i32
    return %c0_i32, %c0_i32_0 : i32, i32
  }
  func.func @transform_2(%arg0: i32) -> (i32, i32) {
    %c0_i32 = arith.constant 0 : i32
    %c0_i32_0 = arith.constant 0 : i32
    %c0_i32_1 = arith.constant 0 : i32
    return %c0_i32, %c0_i32_0 : i32, i32
  }
  func.func @transform_3(%arg0: i32) -> (i32, i32) {
    %c0_i32 = arith.constant 0 : i32
    %c0_i32_0 = arith.constant 0 : i32
    %c0_i32_1 = arith.constant 0 : i32
    return %c0_i32, %c0_i32_0 : i32, i32
  }
  func.func @transform_4(%arg0: i32) -> (i32, i32) {
    %c0_i32 = arith.constant 0 : i32
    %c0_i32_0 = arith.constant 0 : i32
    %c0_i32_1 = arith.constant 0 : i32
    return %c0_i32, %c0_i32_0 : i32, i32
  }
  func.func @transform_5(%arg0: i32) -> (i32, i32) {
    %c0_i32 = arith.constant 0 : i32
    %c0_i32_0 = arith.constant 0 : i32
    %c0_i32_1 = arith.constant 0 : i32
    return %c0_i32, %c0_i32_0 : i32, i32
  }
}

</mosaic_0001>

<bundles_post_ra>
// kernel: bert_forward.4
= control target key start
LH: loop header
LB: loop body
LE: loop exit
PB: predicated region body
PF: predicated region fallthrough
CT: control target
= control target key end

     0   :  { %s399_s18 = smov 0   ;;  %s431_s0 = inlined_call_operand.vmem [shape: f32[2,8,32], index: 0, kind: input, shape index: {}]   ;;  %s432_s1 = inlined_call_operand.vmem [shape: f32[2,8,32], index: 1, kind: input, shape index: {}]   ;;  %s433_s2 = inlined_call_operand.vmem [shape: f32[8,32], index: 2, kind: input, shape index: {}]   ;;  %s434_s3 = inlined_call_operand.vmem [shape: f32[1,32], index: 3, kind: input, shape index: {}]   ;;  %s435_s4 = inlined_call_operand.vmem [shape: f32[1,32], index: 4, kind: input, shape index: {}]   ;;  %s436_s5 = inlined_call_operand.vmem [shape: f32[2,8,32], index: 5, kind: output, shape index: {}]  }
   0x1 LB: > { %s339_s19 = sadd.s32 4294967295, %s367_s18   ;;  %p343_p0 = scmp.ge.s32.totalorder %s367_s18, 1  ;;  %s367_s18 = sphi %s399_s18, %s15_s18  }
   0x2   : > { %p195_p1 = scmp.lt.s32.totalorder %s367_s18, 3 }
   0x4   : > { %p196_p2 = pnand %p343_p0, %p195_p1 }
   0x5   : > { %p225_p3 = scmp.lt.s32.totalorder (!%p196_p2), %s339_s19, 1  ;;  %v240_v2 = vld [vmem:[%s433_s2] sm:$0xff] (!%p196_p2)  ;;  %vm244_vm0 = vcmask (!%p196_p2), 261120  }
   0x6   : > { %199 = sbr.rel (%p196_p2) target bundleno = 336 (0x150), region = 40  ;;  %v347_v15 = vld [vmem:[%s434_s3] ss:$0 sm:$0xff] (!%p196_p2) }
   0x7   : > { %v348_v17 = vld [vmem:[%s435_s4] ss:$0 sm:$0xff] (!%p196_p2) }
   0xd   : > { %s438_s19 = smov (!%p225_p3, %s339_s19), 1 }
   0xe   : > { %s344_s20 = sshll.u32 %s438_s19, 3 }
   0xf   : > { %s228_s23 = scalar_lea.vmem %s431_s0, %s344_s20  ;;  %s232_s26 = scalar_lea.vmem %s432_s1, %s344_s20 }
  0x10   : > { %v237_v0 = vld [vmem:[%s228_s23] sm:$0xff]  ;;  %s236_s10 = scalar_lea.vmem %s436_s5, %s344_s20 }
  0x11   : > { %v238_v1 = vld [vmem:[%s232_s26] sm:$0xff] }
  0x12   : > { %v239_v3 = vadd.f32 %v238_v1, %v237_v0 }
  0x14   : > { %v241_v4 = vadd.f32 %v240_v2, %v239_v3 }
  0x16   : > { %v245_v5 = vsel %vm244_vm0, %v241_v4, 0.0 }
  0x17   : > { %246 = vadd.xlane.f32.xlu0 %v245_v5 }
  0xa4   : > { %v247_v6 = vpop.xlane.xlu0 %246 }
  0xa5   : > { %v249_v7 = vmul.f32 0.03125, %v247_v6 }
  0xa7   : > { %v250_v8 = vsub.f32 %v241_v4, %v249_v7 }
  0xa9   : > { %v251_v9 = vmul.f32 %v250_v8, %v250_v8 }
  0xab   : > { %v252_v10 = vsel %vm244_vm0, %v251_v9, 0.0 }
  0xac   : > { %253 = vadd.xlane.f32.xlu0 %v252_v10 }
 0x139   : > { %v254_v11 = vpop.xlane.xlu0 %253 }
 0x13a   : > { %v255_v12 = vmul.f32 0.03125, %v254_v11 }
 0x13c   : > { %v256_v13 = vadd.f32 1e-12, %v255_v12 }
 0x13e   : > { %359 = vrsqrt.f32 %v256_v13 }
 0x148   : > { %v360_v14 = vpop.eup %359 }
 0x149   : > { %v258_v16 = vmul.f32 %v360_v14, %v250_v8 }
 0x14b   : > { %v265_v18 = vmul.f32 %v347_v15, %v258_v16 }
 0x14d   : > { %v272_v19 = vadd.f32 %v348_v17, %v265_v18 }
 0x14f   : > { %273 = vst.msk [vmem:[%s236_s10] sm:$0xff] %vm244_vm0, %v272_v19 }
 0x150 PF: > { %s15_s18 = sadd.s32 1, %s367_s18  }
 0x151   : > { %p12_p4 = scmp.ge.s32.totalorder %s15_s18, 4  }
 0x153   :  { %14 = sbr.rel (!%p12_p4) target bundleno = 1 (0x1), region = 73 }

// kernel: bert_forward.7
= control target key start
LH: loop header
LB: loop body
LE: loop exit
PB: predicated region body
PF: predicated region fallthrough
CT: control target
= control target key end

     0   :  { %v286_v3 = vmov 0.0|0.0   ;;  %vm287_vm0 = vmmov 0   ;;  %v288_v6 = vmov 0.0   ;;  %s367_s0 = inlined_call_operand.vmem [shape: f32[2,32], index: 0, kind: input, shape index: {}]   ;;  %s368_s1 = inlined_call_operand.vmem [shape: f32[32,32], index: 1, kind: input, shape index: {}]   ;;  %s369_s2 = inlined_call_operand.vmem [shape: f32[1,32], index: 2, kind: input, shape index: {}]   ;;  %s370_s3 = inlined_call_operand.vmem [shape: f32[32,3], index: 3, kind: input, shape index: {}]   ;;  %s371_s4 = inlined_call_operand.vmem [shape: f32[1,3], index: 4, kind: input, shape index: {}]   ;;  %s372_s5 = inlined_call_operand.hbm [shape: f32[2,3], index: 5, kind: output, shape index: {}]  }
   0x1   :  { %v22_v0 = vld [vmem:[%s368_s1] sm:$0xff]  ;;  %v23_v1 = vld [vmem:[%s368_s1 + $0x8] sm:$0xff]  ;;  %v24_v2 = vld [vmem:[%s368_s1 + $0x10] sm:$0xff]  ;;  %244 = vmatprep.subr.bf16.mxu0 %v286_v3  ;;  %230 = vmatprep.mubr.msk.f32.mxu0 %vm287_vm0, %v288_v6 }
   0x2   :  { %v245_v4 = vpack.c.bf16 %v23_v1, %v22_v0  ;;  %v25_v5 = vld [vmem:[%s368_s1 + $0x18] sm:$0xff]  ;;  %250 = vmatprep.subr.bf16.mxu1 %v286_v3  ;;  %241 = vmatprep.mubr.msk.f32.mxu1 %vm287_vm0, %v288_v6 }
   0x3   :  { %10 = vsyncpa [#allocation3], 0  ;;  %v248_v7 = vpack.c.bf16 %v25_v5, %v24_v2  ;;  %v21_v8 = vld [vmem:[%s367_s0] sm:$0x3]  ;;  %vm33_vm1 = vcmask 261120   ;;  %v109_v10 = vld [vmem:[%s370_s3 + $0x8] sm:$0xff] }
   0x4   :  { %246 = vmatpush3.bf16.msra.mxu0 %v245_v4  ;;  %v108_v9 = vld [vmem:[%s370_s3] sm:$0xff]  ;;  %v110_v11 = vld [vmem:[%s370_s3 + $0x10] sm:$0xff]  ;;  %v111_v13 = vld [vmem:[%s370_s3 + $0x18] sm:$0xff]  ;;  %s289_s3 = smov [#allocation2]   ;;  %vm192_vm2 = vcmask 17408  }
   0x5   :  { %247 = vmatprep.subr.bf16.mxu0 %v286_v3  ;;  %v251_v12 = vpack.c.bf16 %v109_v10, %v108_v9  ;;  %v254_v14 = vpack.c.bf16 %v111_v13, %v110_v11  ;;  %v208_v15 = vld [vmem:[%s369_s2] ss:$0 sm:$0xff]  ;;  %s200_s13 = sshll.u32 %s289_s3, 4  ;;  %s201_s13 = int_to_ptr.vmem [resolvable:$true] %s200_s13 }
   0x6   :  { %v210_v20 = vld [vmem:[%s371_s4] ss:$0 sm:$0xff]  ;;  %s262_s2 = scalar_lea.vmem %s201_s13, 32  ;;  %p267_p1 = scmp.lt.s32.totalorder %s201_s13, %s201_s13 }
   0x7   :  { %252 = vmatpush3.bf16.msra.mxu1 %v251_v12  ;;  %p263_p0 = scmp.ne.s32.totalorder %s201_s13, %s262_s2  ;;  %p268_p2 = scmp.lt.s32.totalorder %s262_s2, %s262_s2 }
   0x8   :  { %249 = vmatpush3.bf16.msra.mxu0 %v248_v7  ;;  %253 = vmatprep.subr.bf16.mxu1 %v286_v3 }
   0x9   :  { %p269_p3 = por %p268_p2, %p267_p1 }
   0xb   :  { %231 = vmatmul.mubr.msk.f32.vlgmr.msra.gmra.mrb[0].mxu0 %vm33_vm1, %v21_v8  ;;  %255 = vmatpush3.bf16.msra.mxu1 %v254_v14  ;;  %p270_p4 = pnand %p269_p3, %p263_p0 }
  0xde   :  { %v103_v16 = vpop.f32.mrb[0].mxu0 }
  0xdf   :  { %v104_v17 = vadd.f32 %v208_v15, %v103_v16  ;;  %v232_v18 = vpop.f32.mrb[1].mxu0 }
  0xe1   :  { %260 = vtanh.f32 %v104_v17 }
  0xeb   :  { %v261_v19 = vpop.eup %260 }
  0xec   :  { %242 = vmatmul.mubr.msk.f32.vlgmr.msra.gmra.mrb[0].mxu1 %vm33_vm1, %v261_v19 }
 0x1bf   :  { %v188_v21 = vpop.f32.mrb[0].mxu1 }
 0x1c0   :  { %v189_v22 = vadd.f32 %v210_v20, %v188_v21  ;;  %v243_v23 = vpop.f32.mrb[1].mxu1 }
 0x1c2   :  { %193 = vst.msk [vmem:[#allocation2] sm:$0x3] %vm192_vm2, %v189_v22 }
 0x1c3   :  { %273 = shalt.err (!%p270_p4)
}
 0x1c4   :  { %s274_s16 = scalar_lea.hbm %s372_s5, 32 }
 0x1c5   :  { %p275_p5 = scmp.ne.s32.totalorder %s372_s5, %s274_s16  ;;  %p278_p6 = scmp.lt.u32.totalorder %s274_s16, %s372_s5 }
 0x1c7   :  { %p280_p7 = pnand %p278_p6, %p275_p5 }
 0x1c9   :  { %283 = shalt.err (!%p280_p7)
}
 0x1ca   :  { %203 = dma.vmem_to_hbm [thread:$0]  %s201_s13, 32, %s372_s5, [#allocation3]  }
 0x1cb   :  { %284 = dma.done.wait [#allocation3], 32  }
 0x1cc   :  { %285 = vsyncadd [#allocation3], 4294967264 }
 0x1cd   :  { %207 = vsyncpa [#allocation3], 1 }

// kernel: bert_forward.5
= control target key start
LH: loop header
LB: loop body
LE: loop exit
PB: predicated region body
PF: predicated region fallthrough
CT: control target
= control target key end

     0   :  { %s1588_s25 = smov 0   ;;  %s1751_s0 = inlined_call_operand.vmem [shape: f32[2,8,32], index: 0, kind: input, shape index: {}]   ;;  %s1752_s1 = inlined_call_operand.vmem [shape: f32[32,96], index: 1, kind: input, shape index: {}]   ;;  %s1753_s2 = inlined_call_operand.vmem [shape: f32[1,96], index: 2, kind: input, shape index: {}]   ;;  %s1754_s3 = inlined_call_operand.vmem [shape: f32[32,32], index: 3, kind: input, shape index: {}]   ;;  %s1755_s4 = inlined_call_operand.vmem [shape: f32[1,32], index: 4, kind: input, shape index: {}]   ;;  %s1756_s5 = inlined_call_operand.vmem [shape: f32[1,32], index: 5, kind: input, shape index: {}]   ;;  %s1757_s6 = inlined_call_operand.vmem [shape: f32[1,32], index: 6, kind: input, shape index: {}]   ;;  %s1758_s7 = inlined_call_operand.vmem [shape: f32[32,64], index: 7, kind: input, shape index: {}]   ;;  %s1759_s8 = inlined_call_operand.vmem [shape: f32[1,64], index: 8, kind: input, shape index: {}]   ;;  %s1760_s9 = inlined_call_operand.vmem [shape: f32[64,32], index: 9, kind: input, shape index: {}]   ;;  %s1761_s10 = inlined_call_operand.vmem [shape: f32[1,32], index: 10, kind: input, shape index: {}]   ;;  %s1762_s11 = inlined_call_operand.vmem [shape: f32[1,32], index: 11, kind: input, shape index: {}]   ;;  %s1763_s12 = inlined_call_operand.vmem [shape: f32[1,32], index: 12, kind: input, shape index: {}]   ;;  %s1764_s13 = inlined_call_operand.vmem [shape: f32[2,8,32], index: 13, kind: output, shape index: {}]  }
   0x1 LB: > { %s1306_s26 = sadd.s32 4294967295, %s1508_s25   ;;  %p1310_p0 = scmp.ge.s32.totalorder %s1508_s25, 1  ;;  %s1508_s25 = sphi %s1588_s25, %s23_s25  }
   0x2   : > { %p386_p1 = scmp.lt.s32.totalorder %s1508_s25, 3 }
   0x4   : > { %p387_p2 = pnand %p1310_p0, %p386_p1 }
   0x5   : > { %v437_v0 = vld [vmem:[%s1752_s1] sm:$0xff] (!%p387_p2)  ;;  %v438_v1 = vld [vmem:[%s1752_s1 + $0x8] sm:$0xff] (!%p387_p2)  ;;  %v439_v2 = vld [vmem:[%s1752_s1 + $0x10] sm:$0xff] (!%p387_p2)  ;;  %v1510_v3 = vmov (!%p387_p2), 0.0|0.0   ;;  %vm1511_vm0 = vmmov (!%p387_p2), 0   ;;  %v1512_v6 = vmov (!%p387_p2), 0.0  }
   0x6   : > { %390 = sbr.rel (%p387_p2) target bundleno = 2385 (0x951), region = 72  ;;  %1442 = vmatprep.subr.bf16.mxu0 (!%p387_p2), %v1510_v3  ;;  %v1443_v4 = vpack.c.bf16 (!%p387_p2), %v438_v1, %v437_v0  ;;  %v440_v5 = vld [vmem:[%s1752_s1 + $0x18] sm:$0xff] (!%p387_p2)  ;;  %1375 = vmatprep.mubr.msk.f32.mxu0 (!%p387_p2), %vm1511_vm0, %v1512_v6  ;;  %p428_p3 = scmp.lt.s32.totalorder (!%p387_p2), %s1306_s26, 1  ;;  %vm448_vm1 = vcmask (!%p387_p2), 261120   ;;  %v1313_v9 = vld [vmem:[%s1753_s2] ss:$0 sm:$0xff] (!%p387_p2) }
   0x7   : > { %1383 = vmatprep.subr.mxu1 (!%p387_p2), %v1512_v6  ;;  %1385 = vmatprep.mubr.msk.f32.mxu1 (!%p387_p2), %vm1511_vm0, %v1512_v6  ;;  %v1446_v7 = vpack.c.bf16 (!%p387_p2), %v440_v5, %v439_v2  ;;  %s1513_s24 = smov (!%p387_p2), 112   ;;  %s1514_s27 = smov (!%p387_p2), 96   ;;  %vm529_vm2 = vcmask (!%p387_p2), 130048   ;;  %vm605_vm3 = vcmask (!%p387_p2), 64512   ;;  %v522_v39 = vld [vmem:[%s1754_s3] sm:$0xff] (!%p387_p2)  ;;  %v523_v40 = vld [vmem:[%s1754_s3 + $0x8] sm:$0xff] (!%p387_p2) }
   0x8   : > { %1444 = vmatpush3.bf16.msra.mxu0 (!%p387_p2), %v1443_v4  ;;  %s1515_s28 = smov (!%p387_p2), 80   ;;  %s1516_s29 = smov (!%p387_p2), 48   ;;  %v1452_v43 = vpack.c.bf16 (!%p387_p2), %v523_v40, %v522_v39  ;;  %v524_v45 = vld [vmem:[%s1754_s3 + $0x10] sm:$0xff] (!%p387_p2)  ;;  %v525_v46 = vld [vmem:[%s1754_s3 + $0x18] sm:$0xff] (!%p387_p2)  ;;  %v1323_v55 = vld [vmem:[%s1755_s4] ss:$0 sm:$0xff] (!%p387_p2) }
   0x9   : > { %1445 = vmatprep.subr.bf16.mxu0 (!%p387_p2), %v1510_v3  ;;  %s1517_s30 = smov (!%p387_p2), 64   ;;  %v1449_v47 = vpack.c.bf16 (!%p387_p2), %v525_v46, %v524_v45  ;;  %v1044_v2 = vld [vmem:[%s1758_s7] sm:$0xff] (!%p387_p2)  ;;  %v1045_v4 = vld [vmem:[%s1758_s7 + $0x8] sm:$0xff] (!%p387_p2)  ;;  %vm1148_vm4 = vcmask (!%p387_p2), 523264  }
   0xa   : > { %v1455_v5 = vpack.c.bf16 (!%p387_p2), %v1045_v4, %v1044_v2 }
   0xc   : > { %1447 = vmatpush3.bf16.msra.mxu0 (!%p387_p2), %v1446_v7  ;;  %v1047_v7 = vld [vmem:[%s1758_s7 + $0x18] sm:$0xff] (!%p387_p2) }
   0xd   : > { %s1766_s26 = smov (!%p428_p3, %s1306_s26), 1  ;;  %1378 = vmatprep.subr.mxu0 %v1512_v6 }
   0xe   : > { %s1311_s18 = sshll.u32 %s1766_s26, 3 }
   0xf   : > { %s431_s21 = scalar_lea.vmem %s1751_s0, %s1311_s18 }
  0x10   : > { %v1623_v8 = vld [vmem:[%s431_s21] sm:$0xff]  ;;  %s435_s21 = scalar_lea.vmem %s1764_s13, %s1311_s18 }
  0x11   : > { %1376 = vmatmul.mubr.msk.f32.vlgmr.msra.gmra.mrb[0].mxu0 %vm448_vm1, %v1623_v8 }
  0x12   : > { %1380 = vmatprep.mubr.msk.f32.mxu0 %vm1511_vm0, %v1512_v6 }
  0xe4   : > { %v518_v10 = vpop.f32.mrb[0].mxu0 }
  0xe5   : > { %v519_v11 = vadd.f32 %v1313_v9, %v518_v10  ;;  %v1377_v12 = vpop.f32.mrb[1].mxu0 }
  0xe7   : > { %693 = vrot.lane.b32.xlu1 %v519_v11, %s1513_s24  ;;  %527 = vrot.lane.b32.xlu0 %v519_v11, %s1514_s27 }
  0xeb   : > { %695 = vrot.lane.b32.xlu0 %v519_v11, %s1515_s28 }
 0x159   : > { %v528_v13 = vpop.permute.xlu0 %527  ;;  %v694_v15 = vpop.permute.xlu1 %693 }
 0x15a   : > { %1379 = vmatpush3.xpose.msk.msra.mxu0 %vm529_vm2, %v528_v13  ;;  %v1324_v13 = vld [vmem:[%s1756_s5] ss:$0 sm:$0xff] }
 0x15b   : > { %1388 = vmatprep.subr.mxu0 %v1512_v6 }
 0x15d   : > { %1381 = vmatmul.mubr.msk.f32.vlgmr.msra.gmra.mrb[2].mxu0 %vm529_vm2, %v519_v11  ;;  %v696_v14 = vpop.permute.xlu0 %695 }
 0x15e   : > { %1389 = vmatpush3.xpose.msk.msra.mxu0 %vm529_vm2, %v696_v14  ;;  %1390 = vmatprep.mubr.msk.f32.mxu0 %vm1511_vm0, %v1512_v6 }
 0x15f   : > { %1448 = vmatprep.subr.bf16.mxu0 %v1510_v3 }
 0x161   : > { %1391 = vmatmul.mubr.msk.f32.vlgmr.msra.gmra.mrb[4].mxu0 %vm529_vm2, %v694_v15  ;;  %v1325_v15 = vld [vmem:[%s1757_s6] ss:$0 sm:$0xff] }
 0x162   : > { %1402 = vmatprep.mubr.msk.f32.mxu0 %vm1511_vm0, %v1512_v6  ;;  %1450 = vmatpush3.bf16.msra.mxu0 %v1449_v47 }
 0x163   : > { %1454 = vmatprep.subr.bf16.mxu0 %v1510_v3 }
 0x230   : > { %v600_v16 = vpop.f32.mrb[2].mxu0 }
 0x231   : > { %v604_v17 = vmul.f32 0.25, %v600_v16  ;;  %v1382_v18 = vpop.f32.mrb[3].mxu0 }
 0x232   : > { %v1133_v18 = vld [vmem:[%s1760_s9] sm:$0xff] }
 0x233   : > { %v606_v19 = vsel %vm605_vm3, %v604_v17, -inf }
 0x234   : > { %607 = vmax.xlane.f32.xlu1 %v606_v19  ;;  %v767_v20 = vpop.f32.mrb[4].mxu0  ;;  %v1134_v19 = vld [vmem:[%s1760_s9 + $0x8] sm:$0xff] }
 0x235   : > { %v771_v21 = vmul.f32 0.25, %v767_v20  ;;  %v1392_v22 = vpop.f32.mrb[5].mxu0  ;;  %v1461_v20 = vpack.c.bf16 %v1134_v19, %v1133_v18 }
 0x236   : > { %v1136_v22 = vld [vmem:[%s1760_s9 + $0x18] sm:$0xff] }
 0x237   : > { %v772_v23 = vsel %vm605_vm3, %v771_v21, -inf }
 0x238   : > { %773 = vmax.xlane.f32.xlu0 %v772_v23 }
 0x2c1   : > { %v608_v24 = vpop.xlane.xlu1 %607 }
 0x2c2   : > { %v609_v25 = vsub.f32 %v604_v17, %v608_v24  ;;  %v1137_v24 = vld [vmem:[%s1760_s9 + $0x20] sm:$0xff] }
 0x2c4   : > { %v610_v26 = vmul.f32 1.442695, %v609_v25  ;;  %v1138_v25 = vld [vmem:[%s1760_s9 + $0x28] sm:$0xff] }
 0x2c5   : > { %v774_v27 = vpop.xlane.xlu0 %773 }
 0x2c6   : > { %1488 = vpow2.f32 %v610_v26  ;;  %v775_v28 = vsub.f32 %v771_v21, %v774_v27  ;;  %v1135_v21 = vld [vmem:[%s1760_s9 + $0x10] sm:$0xff]  ;;  %v1467_v26 = vpack.c.bf16 %v1138_v25, %v1137_v24 }
 0x2c7   : > { %v1464_v23 = vpack.c.bf16 %v1136_v22, %v1135_v21  ;;  %v1139_v27 = vld [vmem:[%s1760_s9 + $0x30] sm:$0xff] }
 0x2c8   : > { %v776_v29 = vmul.f32 1.442695, %v775_v28  ;;  %v1140_v28 = vld [vmem:[%s1760_s9 + $0x38] sm:$0xff] }
 0x2ca   : > { %1490 = vpow2.f32 %v776_v29  ;;  %v1470_v29 = vpack.c.bf16 %v1140_v28, %v1139_v27 }
 0x2d0   : > { %v1489_v30 = vpop.eup %1488 }
 0x2d1   : > { %v612_v31 = vsel %vm605_vm3, %v1489_v30, 0.0 }
 0x2d2   : > { %613 = vadd.xlane.f32.xlu0 %v612_v31 }
 0x2d4   : > { %v1491_v32 = vpop.eup %1490 }
 0x2d5   : > { %v778_v33 = vsel %vm605_vm3, %v1491_v32, 0.0 }
 0x2d6   : > { %779 = vadd.xlane.f32.xlu1 %v778_v33 }
 0x2e7   : > { %783 = vrot.lane.b32.xlu1 %v519_v11, %s1516_s29 }
 0x2e8   : > { %617 = vrot.lane.b32.xlu0 %v519_v11, %s1517_s30 }
 0x35f   : > { %v614_v34 = vpop.xlane.xlu0 %613 }
 0x360   : > { %1492 = vrcp.f32 %v614_v34 }
 0x363   : > { %v780_v35 = vpop.xlane.xlu1 %779  ;;  %v618_v36 = vpop.permute.xlu0 %617 }
 0x364   : > { %1494 = vrcp.f32 %v780_v35  ;;  %1384 = vmatpush3.msra.mxu1 %v618_v36 }
 0x365   : > { %1393 = vmatprep.subr.mxu1 %v1512_v6 }
 0x367   : > { %v784_v41 = vpop.permute.xlu1 %783 }
 0x36a   : > { %v1493_v37 = vpop.eup %1492 }
 0x36b   : > { %v616_v38 = vmul.f32 %v1493_v37, %v1489_v30  ;;  %v1326_v30 = vld [vmem:[%s1759_s8] ss:$0 sm:$0xff] }
 0x36d   : > { %1386 = vmatmul.mubr.msk.f32.vlgmr.msra.gmra.mrb[0].mxu1 %vm605_vm3, %v616_v38  ;;  %v1328_v38 = vld [vmem:[%s1761_s10] ss:$0 sm:$0xff] }
 0x36e   : > { %v1495_v42 = vpop.eup %1494  ;;  %1394 = vmatpush3.msra.mxu1 %v784_v41  ;;  %1395 = vmatprep.mubr.msk.f32.mxu1 %vm1511_vm0, %v1512_v6 }
 0x36f   : > { %v782_v44 = vmul.f32 %v1495_v42, %v1491_v32  ;;  %1451 = vmatprep.subr.bf16.mxu1 %v1510_v3 }
 0x371   : > { %1396 = vmatmul.mubr.msk.f32.vlgmr.msra.gmra.mrb[2].mxu1 %vm605_vm3, %v782_v44 }
 0x372   : > { %1453 = vmatpush3.bf16.msra.mxu1 %v1452_v43  ;;  %1409 = vmatprep.mubr.msk.f32.mxu1 %vm1511_vm0, %v1512_v6 }
 0x373   : > { %1460 = vmatprep.subr.bf16.mxu1 %v1510_v3 }
 0x440   : > { %v689_v48 = vpop.f32.mrb[0].mxu1 }
 0x441   : > { %v1387_v49 = vpop.f32.mrb[1].mxu1  ;;  %1410 = vmatmul.mubr.msk.f32.vlgmr.msra.gmra.mrb[4].mxu1 %vm529_vm2, %v689_v48 }
 0x442   : > { %1439 = vmatprep.mubr.msk.f32.mxu1 %vm1511_vm0, %v1512_v6  ;;  %1462 = vmatpush3.bf16.msra.mxu1 %v1461_v20 }
 0x443   : > { %1463 = vmatprep.subr.bf16.mxu1 %v1510_v3 }
 0x444   : > { %v855_v50 = vpop.f32.mrb[2].mxu1 }
 0x445   : > { %v1397_v51 = vpop.f32.mrb[3].mxu1  ;;  %1403 = vmatmul.mubr.msk.f32.vlgmr.msra.gmra.mrb[6].mxu0 %vm529_vm2, %v855_v50 }
 0x446   : > { %1420 = vmatprep.mubr.msk.f32.mxu0 %vm1511_vm0, %v1512_v6  ;;  %1456 = vmatpush3.bf16.msra.mxu0 %v1455_v5  ;;  %v1046_v6 = vld [vmem:[%s1758_s7 + $0x10] sm:$0xff] }
 0x447   : > { %1457 = vmatprep.subr.bf16.mxu0 %v1510_v3  ;;  %1465 = vmatpush3.bf16.msra.mxu1 %v1464_v23 }
 0x448   : > { %1466 = vmatprep.subr.bf16.mxu1 %v1510_v3 }
 0x44b   : > { %1468 = vmatpush3.bf16.msra.mxu1 %v1467_v26 }
 0x44c   : > { %1469 = vmatprep.subr.bf16.mxu1 %v1510_v3 }
 0x44f   : > { %1471 = vmatpush3.bf16.msra.mxu1 %v1470_v29 }
 0x514   : > { %v1001_v52 = vpop.f32.mrb[4].mxu1 }
 0x515   : > { %v1411_v53 = vpop.f32.mrb[5].mxu1 }
 0x516   : > { %v1330_v53 = vld [vmem:[%s1762_s11] ss:$0 sm:$0xff] }
 0x518   : > { %v928_v54 = vpop.f32.mrb[6].mxu0 }
 0x519   : > { %v1002_v56 = vadd.f32 %v1001_v52, %v928_v54  ;;  %v1404_v57 = vpop.f32.mrb[7].mxu0 }
 0x51b   : > { %v1012_v58 = vadd.f32 %v1323_v55, %v1002_v56  ;;  %v1331_v55 = vld [vmem:[%s1763_s12] ss:$0 sm:$0xff] }
 0x51d   : > { %v1013_v59 = vadd.f32 %v1012_v58, %v1623_v8  ;;  %v1458_v8 = vpack.c.bf16 %v1047_v7, %v1046_v6 }
 0x51f   : > { %v1016_v60 = vsel %vm448_vm1, %v1013_v59, 0.0  ;;  %1459 = vmatpush3.bf16.msra.mxu0 %v1458_v8 }
 0x520   : > { %1017 = vadd.xlane.f32.xlu1 %v1016_v60 }
 0x5ad   : > { %v1018_v61 = vpop.xlane.xlu1 %1017 }
 0x5ae   : > { %v1020_v62 = vmul.f32 0.03125, %v1018_v61 }
 0x5b0   : > { %v1021_v63 = vsub.f32 %v1013_v59, %v1020_v62 }
 0x5b2   : > { %v1022_v0 = vmul.f32 %v1021_v63, %v1021_v63 }
 0x5b4   : > { %v1023_v1 = vsel %vm448_vm1, %v1022_v0, 0.0 }
 0x5b5   : > { %1024 = vadd.xlane.f32.xlu0 %v1023_v1 }
 0x642   : > { %v1025_v9 = vpop.xlane.xlu0 %1024 }
 0x643   : > { %v1026_v10 = vmul.f32 0.03125, %v1025_v9 }
 0x645   : > { %v1027_v11 = vadd.f32 1e-12, %v1026_v10 }
 0x647   : > { %1496 = vrsqrt.f32 %v1027_v11 }
 0x651   : > { %v1497_v12 = vpop.eup %1496 }
 0x652   : > { %v1029_v14 = vmul.f32 %v1497_v12, %v1021_v63 }
 0x654   : > { %v1036_v16 = vmul.f32 %v1324_v13, %v1029_v14 }
 0x656   : > { %v1043_v17 = vadd.f32 %v1325_v15, %v1036_v16 }
 0x658   : > { %1421 = vmatmul.mubr.msk.f32.vlgmr.msra.gmra.mrb[8].mxu0 %vm448_vm1, %v1043_v17 }
 0x72b   : > { %v1124_v31 = vpop.f32.mrb[8].mxu0 }
 0x72c   : > { %v1125_v32 = vadd.f32 %v1326_v30, %v1124_v31  ;;  %v1422_v33 = vpop.f32.mrb[9].mxu0 }
 0x72e   : > { %v1129_v34 = vmul.f32 0.70710677, %v1125_v32  ;;  %v1128_v35 = vmul.f32 0.5, %v1125_v32 }
 0x730   : > { %1498 = verf.f32 %v1129_v34 }
 0x73a   : > { %v1499_v3 = vpop.eup %1498 }
 0x73b   : > { %v1131_v36 = vadd.f32 1.0, %v1499_v3 }
 0x73d   : > { %v1132_v37 = vmul.f32 %v1131_v36, %v1128_v35 }
 0x73f   : > { %1440 = vmatmul.mubr.msk.f32.vlgmr.msra.gmra.mrb[6].mxu1 %vm1148_vm4, %v1132_v37 }
 0x812   : > { %v1218_v39 = vpop.f32.mrb[6].mxu1 }
 0x813   : > { %v1219_v40 = vadd.f32 %v1328_v38, %v1218_v39  ;;  %v1441_v41 = vpop.f32.mrb[7].mxu1 }
 0x815   : > { %v1222_v42 = vadd.f32 %v1219_v40, %v1043_v17 }
 0x817   : > { %v1225_v43 = vsel %vm448_vm1, %v1222_v42, 0.0 }
 0x818   : > { %1226 = vadd.xlane.f32.xlu0 %v1225_v43 }
 0x8a5   : > { %v1227_v44 = vpop.xlane.xlu0 %1226 }
 0x8a6   : > { %v1228_v45 = vmul.f32 0.03125, %v1227_v44 }
 0x8a8   : > { %v1229_v46 = vsub.f32 %v1222_v42, %v1228_v45 }
 0x8aa   : > { %v1230_v47 = vmul.f32 %v1229_v46, %v1229_v46 }
 0x8ac   : > { %v1231_v48 = vsel %vm448_vm1, %v1230_v47, 0.0 }
 0x8ad   : > { %1232 = vadd.xlane.f32.xlu1 %v1231_v48 }
 0x93a   : > { %v1233_v49 = vpop.xlane.xlu1 %1232 }
 0x93b   : > { %v1234_v50 = vmul.f32 0.03125, %v1233_v49 }
 0x93d   : > { %v1235_v51 = vadd.f32 1e-12, %v1234_v50 }
 0x93f   : > { %1500 = vrsqrt.f32 %v1235_v51 }
 0x949   : > { %v1501_v52 = vpop.eup %1500 }
 0x94a   : > { %v1237_v54 = vmul.f32 %v1501_v52, %v1229_v46 }
 0x94c   : > { %v1244_v56 = vmul.f32 %v1330_v53, %v1237_v54 }
 0x94e   : > { %v1251_v57 = vadd.f32 %v1331_v55, %v1244_v56 }
 0x950   : > { %1252 = vst.msk [vmem:[%s435_s21] sm:$0xff] %vm448_vm1, %v1251_v57 }
 0x951 PF: > { %s23_s25 = sadd.s32 1, %s1508_s25  }
 0x952   : > { %p20_p4 = scmp.ge.s32.totalorder %s23_s25, 4  }
 0x954   :  { %22 = sbr.rel (!%p20_p4) target bundleno = 1 (0x1), region = 102 }

</bundles_post_ra>
